<compile_context>
chip_gen: v7x
topology: tpu7x:2x2x1
jax: 0.10.0
libtpu: 0.0.40
codegen_flags: <defaults>
</compile_context>

<pallas_src>
import functools

import jax
import jax.numpy as jnp
from jax.experimental import pallas as pl
from jax.experimental.pallas import tpu as pltpu

NEGATIVE_SLOPE = 0.2

_VMEM_TILE_BUDGET = 40 * 1024 * 1024   # tile-choice budget, headroom under v7x 64 MiB/TC
_VMEM_LIMIT_CAP = 56 * 1024 * 1024     # never ask for more scoped VMEM than this


def _round_up(x, m):
    return ((x + m - 1) // m) * m


def _padded_tile_bytes(rows, cols, itemsize, nbuf=2):
    """VMEM bytes for a (rows, cols) block padded to (8, 128) tiles, x nbuf buffers."""
    return nbuf * _round_up(max(rows, 1), 8) * _round_up(max(cols, 1), 128) * itemsize


def _vmem_need_bytes(tm, D, H, E, wbytes):
    need = _padded_tile_bytes(tm, D, wbytes)        # x tile (double-buffered)
    need += _padded_tile_bytes(D, H, wbytes)        # expert-0 fc1 weight (resident)
    need += _padded_tile_bytes(H, H, wbytes)        # steady-state fc1 weight (dbl-buf)
    need += 2 * _padded_tile_bytes(1, H, 4)         # b1 row + w2 row
    need += _padded_tile_bytes(tm, E, 4)            # resident output block
    need += _padded_tile_bytes(tm, H, 4, nbuf=1)    # cascade carry scratch
    return need


def _choose_block_m(batch, D, H, E, wbytes, target):
    """Largest batch tile (multiple of 8) that fits the VMEM budget, capped by batch."""
    tm = min(_round_up(max(target, 8), 8), _round_up(max(batch, 8), 8))
    while tm > 8 and _vmem_need_bytes(tm, D, H, E, wbytes) > _VMEM_TILE_BUDGET:
        tm = _round_up(tm // 2, 8)
    return tm


def _cascade_kernel(negative_slope, x_ref, w1f_ref, w1r_ref, b1_ref, w2_ref,
                    b2_ref, pred_ref, z_ref):
    """One (batch_tile, expert) grid step of the fused cascade.

    x_ref    : (tm, D)    input tile (read only at expert 0)
    w1f_ref  : (D, H)     expert 0's fc1 weight (resident full-array block)
    w1r_ref  : (H, H)     expert max(e,1)'s fc1 weight (experts 1..E-1)
    b1_ref   : (1, H)     this expert's fc1 bias
    w2_ref   : (1, H)     this expert's fc2 weight as a row
    b2_ref   : (E,)       fc2 biases in SMEM
    pred_ref : (tm, E)    resident output block (one column written per expert)
    z_ref    : (tm, H)    f32 VMEM scratch carrying the cascade intermediate
    """
    e = pl.program_id(1)

    b1 = b1_ref[...]                                          # (1, H) f32

    def fc1_act(inp, w_ref):
        w = w_ref[...]
        z = jnp.dot(inp.astype(w.dtype), w, preferred_element_type=jnp.float32)
        z = z + b1
        return jnp.where(z > 0, z, negative_slope * z)        # leaky_relu(0.2)

    # fc1: expert 0 consumes the (tm, D) input; experts >0 consume the carried
    # (tm, H) activation.  The carry is written here, before the fc2 tail, so
    # the next grid step's MXU input is ready as early as possible.
    @pl.when(e == 0)
    def _():
        z_ref[...] = fc1_act(x_ref[...], w1f_ref)

    @pl.when(e > 0)
    def _():
        z_ref[...] = fc1_act(z_ref[...], w1r_ref)

    # fc2 (H -> 1): VPU multiply + lane reduce, then EUP sigmoid.
    z1 = z_ref[...]                                           # (tm, H) f32
    logit = jnp.sum(z1 * w2_ref[...], axis=-1, keepdims=True) + b2_ref[e]
    pred = jax.nn.sigmoid(logit)                              # (tm, 1) f32

    # Masked store of column e into the resident (tm, E) output block:
    # no read-modify-write of the block and no zero-init at e == 0.
    col = jax.lax.broadcasted_iota(jnp.int32, pred_ref.shape, 1)
    pltpu.store(pred_ref,
                jnp.broadcast_to(pred, pred_ref.shape).astype(pred_ref.dtype),
                mask=(col == e))


def cascaded_local_experts(x, params, *, block_m=1024, weight_dtype=None):
    """Fused cascade: x_{i+1} = leaky_relu(fc1_i(x_i)); returns (B, E) sigmoids."""
    B, D = x.shape
    E = len(params)
    H = params[0][0].shape[1]
    out_dtype = x.dtype
    weight_dtype = jnp.dtype(weight_dtype) if weight_dtype is not None else jnp.dtype(jnp.float32)
    wbytes = weight_dtype.itemsize

    tm = _choose_block_m(B, D, H, E, wbytes, block_m)
    B_pad = _round_up(B, tm)
    grid = (B_pad // tm, E)

    # Host-side parameter stacking; NO fan-in zero-padding.
    w1_first = params[0][0].astype(weight_dtype)                                 # (D, H)
    if E > 1:
        w1_rest = jnp.stack([p[0] for p in params[1:]]).astype(weight_dtype)     # (E-1, H, H)
    else:
        w1_rest = jnp.zeros((1, H, H), weight_dtype)                             # dummy, unused
    b1 = jnp.stack([p[1].reshape(1, H) for p in params]).astype(jnp.float32)     # (E, 1, H)
    w2 = jnp.stack([p[2].reshape(1, H) for p in params]).astype(jnp.float32)     # (E, 1, H)
    b2 = jnp.stack([p[3].reshape(()) for p in params]).astype(jnp.float32)       # (E,)

    x_in = x.astype(weight_dtype)
    if B_pad != B:
        x_in = jnp.zeros((B_pad, D), weight_dtype).at[:B, :].set(x_in)

    need = _vmem_need_bytes(tm, D, H, E, wbytes)
    vmem_limit = int(min(max(need + need // 4, 32 * 1024 * 1024), _VMEM_LIMIT_CAP))
    # TODO(synk): for very large H (e.g. f32 H >= ~2048 on v7x) the contraction
    # dim would additionally need tiling (inner accumulated K loop); not needed here.

    kernel = functools.partial(_cascade_kernel, NEGATIVE_SLOPE)
    out = pl.pallas_call(
        kernel,
        out_shape=jax.ShapeDtypeStruct((B_pad, E), out_dtype),
        grid_spec=pltpu.PrefetchScalarGridSpec(
            num_scalar_prefetch=0,
            grid=grid,
            in_specs=[
                pl.BlockSpec((tm, D), lambda i, j: (i, 0)),              # x tile
                pl.BlockSpec((D, H), lambda i, j: (0, 0)),               # W1 expert 0 (resident)
                pl.BlockSpec((None, H, H),
                             lambda i, j: (jnp.maximum(j - 1, 0), 0, 0)),  # W1 experts 1..E-1
                pl.BlockSpec((None, 1, H), lambda i, j: (j, 0, 0)),      # b1 row
                pl.BlockSpec((None, 1, H), lambda i, j: (j, 0, 0)),      # w2 row
                pl.BlockSpec(memory_space=pltpu.MemorySpace.SMEM),       # b2 scalars
            ],
            out_specs=pl.BlockSpec((tm, E), lambda i, j: (i, 0)),        # resident preds
            scratch_shapes=[pltpu.VMEM((tm, H), jnp.float32)],           # cascade carry
        ),
        compiler_params=pltpu.CompilerParams(
            dimension_semantics=("parallel", "arbitrary"),
            vmem_limit_bytes=vmem_limit),
    )(x_in, w1_first, w1_rest, b1, w2, b2)

    return out if B_pad == B else out[:B]


def init_params(key, input_size, hidden_size, num_experts):
    """Deterministic init mimicking nn.Linear's U(-1/sqrt(fan_in), 1/sqrt(fan_in))."""
    params = []
    in_sz = input_size
    for _ in range(num_experts):
        key, k1, k2, k3, k4 = jax.random.split(key, 5)
        bound1 = 1.0 / float(jnp.sqrt(jnp.float32(in_sz)))
        w1 = jax.random.uniform(k1, (in_sz, hidden_size), jnp.float32, -bound1, bound1)
        b1 = jax.random.uniform(k2, (1, hidden_size), jnp.float32, -bound1, bound1)
        bound2 = 1.0 / float(jnp.sqrt(jnp.float32(hidden_size)))
        w2 = jax.random.uniform(k3, (hidden_size, 1), jnp.float32, -bound2, bound2)
        b2 = jax.random.uniform(k4, (1, 1), jnp.float32, -bound2, bound2)
        params.append((w1, b1, w2, b2))
        in_sz = hidden_size
    return params


def _reference(x, params):
    """Pure-JAX reference matching the PyTorch module."""
    preds = []
    for (w1, b1, w2, b2) in params:
        z1 = x @ w1 + b1
        z1 = jnp.where(z1 > 0, z1, NEGATIVE_SLOPE * z1)
        z2 = jax.nn.sigmoid(z1 @ w2 + b2)
        preds.append(z2)
        x = z1
    return jnp.concatenate(preds, axis=1)


if __name__ == "__main__":
    batch = 4
    input_size = 16
    hidden_size = 32
    num_experts = 3

    key = jax.random.PRNGKey(0)
    key, kx = jax.random.split(key)
    x = jax.random.normal(kx, (batch, input_size), jnp.float32)
    params = init_params(key, input_size, hidden_size, num_experts)

    ref = _reference(x, params)

    # Exact f32 path.
    out = jax.block_until_ready(cascaded_local_experts(x, params))
    assert out.shape == (batch, num_experts), out.shape
    assert jnp.allclose(out, ref, atol=1e-5, rtol=1e-5), (out, ref)

    # bf16 weight/input path (halves W1 HBM traffic on large shapes; looser tolerance).
    out_bf16 = jax.block_until_ready(
        cascaded_local_experts(x, params, weight_dtype=jnp.bfloat16))
    assert out_bf16.shape == (batch, num_experts), out_bf16.shape
    assert jnp.allclose(out_bf16, ref, atol=5e-2, rtol=5e-2), (out_bf16, ref)

    print("KERNEL_OK")
</pallas_src>

<mosaic_0001>
module attributes {stable_mosaic.version = 11 : i64} {
  func.func @_cascade_kernel(%arg0: i32, %arg1: i32, %arg2: memref<8x16xf32, #tpu.memory_space<vmem>>, %arg3: memref<16x32xf32, #tpu.memory_space<vmem>>, %arg4: memref<1x32x32xf32, #tpu.memory_space<vmem>>, %arg5: memref<1x1x32xf32, #tpu.memory_space<vmem>>, %arg6: memref<1x1x32xf32, #tpu.memory_space<vmem>>, %arg7: memref<3xf32, #tpu.memory_space<smem>>, %arg8: memref<8x3xf32, #tpu.memory_space<vmem>>, %arg9: memref<8x32xf32, #tpu.memory_space<vmem>>) attributes {dimension_semantics = [#tpu.dimension_semantics<parallel>, #tpu.dimension_semantics<arbitrary>], iteration_bounds = array<i64: 1, 3>, scalar_prefetch = 0 : i64, scratch_operands = 1 : i64, tpu.core_type = #tpu.core_type<tc>, window_params = [{transform_indices = @transform_0, window_bounds = array<i64: 8, 16>}, {pipeline_mode = #tpu.pipeline_mode<synchronous>, transform_indices = @transform_1, window_bounds = array<i64: 16, 32>}, {transform_indices = @transform_2, window_bounds = array<i64: 1, 32, 32>}, {transform_indices = @transform_3, window_bounds = array<i64: 1, 1, 32>}, {transform_indices = @transform_4, window_bounds = array<i64: 1, 1, 32>}, {transform_indices = @transform_5, window_bounds = array<i64: 3>}, {transform_indices = @transform_6, window_bounds = array<i64: 8, 3>}]} {
    %c0 = arith.constant 0 : index
    %c0_0 = arith.constant 0 : index
    %c0_1 = arith.constant 0 : index
    %0 = vector.load %arg5[%c0, %c0_0, %c0_1] : memref<1x1x32xf32, #tpu.memory_space<vmem>>, vector<1x1x32xf32>
    %1 = vector.shape_cast %0 : vector<1x1x32xf32> to vector<1x32xf32>
    %c0_i32 = arith.constant 0 : i32
    %2 = arith.cmpi eq, %arg1, %c0_i32 : i32
    %3 = arith.extui %2 : i1 to i32
    %c0_i32_2 = arith.constant 0 : i32
    %4 = arith.cmpi ne, %3, %c0_i32_2 : i32
    scf.if %4 {
      %c0_13 = arith.constant 0 : index
      %c0_14 = arith.constant 0 : index
      %30 = vector.load %arg2[%c0_13, %c0_14] : memref<8x16xf32, #tpu.memory_space<vmem>>, vector<8x16xf32>
      %c0_15 = arith.constant 0 : index
      %c0_16 = arith.constant 0 : index
      %31 = vector.load %arg3[%c0_15, %c0_16] : memref<16x32xf32, #tpu.memory_space<vmem>>, vector<16x32xf32>
      %cst_17 = arith.constant dense<0.000000e+00> : vector<8x32xf32>
      %32 = tpu.matmul %30, %31, %cst_17 {dimension_numbers = #tpu.dot_dimension_numbers<[1], [0], [0], [1], [0, 0, 1, 1], [], []>} : vector<8x16xf32>, vector<16x32xf32>, vector<8x32xf32> -> vector<8x32xf32>
      %33 = vector.broadcast %1 : vector<1x32xf32> to vector<8x32xf32>
      %34 = arith.addf %32, %33 : vector<8x32xf32>
      %cst_18 = arith.constant 0.000000e+00 : f32
      %35 = vector.broadcast %cst_18 : f32 to vector<8x32xf32>
      %36 = arith.cmpf ogt, %34, %35 : vector<8x32xf32>
      %cst_19 = arith.constant 2.000000e-01 : f32
      %37 = vector.broadcast %cst_19 : f32 to vector<8x32xf32>
      %38 = arith.mulf %37, %34 : vector<8x32xf32>
      %39 = arith.select %36, %34, %38 : vector<8x32xi1>, vector<8x32xf32>
      %c0_20 = arith.constant 0 : index
      %c0_21 = arith.constant 0 : index
      %40 = vector.load %arg9[%c0_20, %c0_21] : memref<8x32xf32, #tpu.memory_space<vmem>>, vector<8x32xf32>
      tpu.vector_store %arg9[%c0_20, %c0_21], %39 {strides = array<i32>} : memref<8x32xf32, #tpu.memory_space<vmem>>, vector<8x32xf32>,
    } else {
    }
    %c0_i32_3 = arith.constant 0 : i32
    %5 = arith.cmpi sgt, %arg1, %c0_i32_3 : i32
    %6 = arith.extui %5 : i1 to i32
    %c0_i32_4 = arith.constant 0 : i32
    %7 = arith.cmpi ne, %6, %c0_i32_4 : i32
    scf.if %7 {
      %c0_13 = arith.constant 0 : index
      %c0_14 = arith.constant 0 : index
      %30 = vector.load %arg9[%c0_13, %c0_14] : memref<8x32xf32, #tpu.memory_space<vmem>>, vector<8x32xf32>
      %c0_15 = arith.constant 0 : index
      %c0_16 = arith.constant 0 : index
      %c0_17 = arith.constant 0 : index
      %31 = vector.load %arg4[%c0_15, %c0_16, %c0_17] : memref<1x32x32xf32, #tpu.memory_space<vmem>>, vector<1x32x32xf32>
      %32 = vector.shape_cast %31 : vector<1x32x32xf32> to vector<32x32xf32>
      %cst_18 = arith.constant dense<0.000000e+00> : vector<8x32xf32>
      %33 = tpu.matmul %30, %32, %cst_18 {dimension_numbers = #tpu.dot_dimension_numbers<[1], [0], [0], [1], [0, 0, 1, 1], [], []>} : vector<8x32xf32>, vector<32x32xf32>, vector<8x32xf32> -> vector<8x32xf32>
      %34 = vector.broadcast %1 : vector<1x32xf32> to vector<8x32xf32>
      %35 = arith.addf %33, %34 : vector<8x32xf32>
      %cst_19 = arith.constant 0.000000e+00 : f32
      %36 = vector.broadcast %cst_19 : f32 to vector<8x32xf32>
      %37 = arith.cmpf ogt, %35, %36 : vector<8x32xf32>
      %cst_20 = arith.constant 2.000000e-01 : f32
      %38 = vector.broadcast %cst_20 : f32 to vector<8x32xf32>
      %39 = arith.mulf %38, %35 : vector<8x32xf32>
      %40 = arith.select %37, %35, %39 : vector<8x32xi1>, vector<8x32xf32>
      %c0_21 = arith.constant 0 : index
      %c0_22 = arith.constant 0 : index
      %41 = vector.load %arg9[%c0_21, %c0_22] : memref<8x32xf32, #tpu.memory_space<vmem>>, vector<8x32xf32>
      tpu.vector_store %arg9[%c0_21, %c0_22], %40 {strides = array<i32>} : memref<8x32xf32, #tpu.memory_space<vmem>>, vector<8x32xf32>,
    } else {
    }
    %c0_5 = arith.constant 0 : index
    %c0_6 = arith.constant 0 : index
    %8 = vector.load %arg9[%c0_5, %c0_6] : memref<8x32xf32, #tpu.memory_space<vmem>>, vector<8x32xf32>
    %c0_7 = arith.constant 0 : index
    %c0_8 = arith.constant 0 : index
    %c0_9 = arith.constant 0 : index
    %9 = vector.load %arg6[%c0_7, %c0_8, %c0_9] : memref<1x1x32xf32, #tpu.memory_space<vmem>>, vector<1x1x32xf32>
    %10 = vector.shape_cast %9 : vector<1x1x32xf32> to vector<1x32xf32>
    %11 = vector.broadcast %10 : vector<1x32xf32> to vector<8x32xf32>
    %12 = arith.mulf %8, %11 : vector<8x32xf32>
    %cst = arith.constant dense<0.000000e+00> : vector<8xf32>
    %13 = vector.multi_reduction <add>, %12, %cst [1] : vector<8x32xf32> to vector<8xf32>
    %14 = vector.shape_cast %13 : vector<8xf32> to vector<8x1xf32>
    %15 = arith.index_cast %arg1 : i32 to index
    %16 = memref.load %arg7[%15] : memref<3xf32, #tpu.memory_space<smem>>
    %17 = vector.broadcast %16 : f32 to vector<8x1xf32>
    %18 = arith.addf %14, %17 : vector<8x1xf32>
    %19 = arith.negf %18 : vector<8x1xf32>
    %20 = math.exp %19 : vector<8x1xf32>
    %cst_10 = arith.constant 1.000000e+00 : f32
    %21 = vector.broadcast %cst_10 : f32 to vector<8x1xf32>
    %22 = arith.addf %21, %20 : vector<8x1xf32>
    %23 = arith.divf %21, %22 : vector<8x1xf32>
    %24 = tpu.iota {dimensions = array<i32: 1>} : vector<8x3xi32>
    %25 = vector.shape_cast %23 : vector<8x1xf32> to vector<8x1xf32>
    %26 = vector.broadcast %25 : vector<8x1xf32> to vector<8x3xf32>
    %27 = vector.broadcast %arg1 : i32 to vector<8x3xi32>
    %28 = arith.cmpi eq, %24, %27 : vector<8x3xi32>
    %c0_11 = arith.constant 0 : index
    %c0_12 = arith.constant 0 : index
    %29 = vector.load %arg8[%c0_11, %c0_12] : memref<8x3xf32, #tpu.memory_space<vmem>>, vector<8x3xf32>
    tpu.vector_store %arg8[%c0_11, %c0_12], %26 masked %28 {strides = array<i32>} : memref<8x3xf32, #tpu.memory_space<vmem>>, vector<8x3xf32>, vector<8x3xi1>
    return
  }
  func.func @transform_0(%arg0: i32, %arg1: i32) -> (i32, i32) {
    %c0_i32 = arith.constant 0 : i32
    %c0_i32_0 = arith.constant 0 : i32
    return %arg0, %c0_i32 : i32, i32
  }
  func.func @transform_1(%arg0: i32, %arg1: i32) -> (i32, i32) {
    %c0_i32 = arith.constant 0 : i32
    %c0_i32_0 = arith.constant 0 : i32
    %c0_i32_1 = arith.constant 0 : i32
    return %c0_i32, %c0_i32_0 : i32, i32
  }
  func.func @transform_2(%arg0: i32, %arg1: i32) -> (i32, i32, i32) {
    %c1_i32 = arith.constant 1 : i32
    %0 = arith.subi %arg1, %c1_i32 : i32
    %c0_i32 = arith.constant 0 : i32
    %1 = arith.maxsi %0, %c0_i32 : i32
    %c0_i32_0 = arith.constant 0 : i32
    %c0_i32_1 = arith.constant 0 : i32
    %c0_i32_2 = arith.constant 0 : i32
    return %1, %c0_i32_0, %c0_i32_1 : i32, i32, i32
  }
  func.func @transform_3(%arg0: i32, %arg1: i32) -> (i32, i32, i32) {
    %c0_i32 = arith.constant 0 : i32
    %c0_i32_0 = arith.constant 0 : i32
    %c0_i32_1 = arith.constant 0 : i32
    return %arg1, %c0_i32, %c0_i32_0 : i32, i32, i32
  }
  func.func @transform_4(%arg0: i32, %arg1: i32) -> (i32, i32, i32) {
    %c0_i32 = arith.constant 0 : i32
    %c0_i32_0 = arith.constant 0 : i32
    %c0_i32_1 = arith.constant 0 : i32
    return %arg1, %c0_i32, %c0_i32_0 : i32, i32, i32
  }
  func.func @transform_5(%arg0: i32, %arg1: i32) -> i32 {
    %c0_i32 = arith.constant 0 : i32
    %c0_i32_0 = arith.constant 0 : i32
    return %c0_i32 : i32
  }
  func.func @transform_6(%arg0: i32, %arg1: i32) -> (i32, i32) {
    %c0_i32 = arith.constant 0 : i32
    %c0_i32_0 = arith.constant 0 : i32
    return %arg0, %c0_i32 : i32, i32
  }
}

</mosaic_0001>

<bundles_post_ra>
// kernel: tpu_custom_call.1
= control target key start
LH: loop header
LB: loop body
LE: loop exit
PB: predicated region body
PF: predicated region fallthrough
CT: control target
= control target key end

     0   :  { %11 = vsyncpa [#allocation4], 0  ;;  %s1325_s0 = inlined_call_operand.hbm [shape: f32[8,16], index: 0, kind: input, shape index: {}]   ;;  %s1326_s1 = inlined_call_operand.hbm [shape: f32[16,32], index: 1, kind: input, shape index: {}]   ;;  %s1327_s2 = inlined_call_operand.hbm [shape: f32[2,32,32], index: 2, kind: input, shape index: {}]   ;;  %s1328_s3 = inlined_call_operand.vmem [shape: f32[3,1,32], index: 3, kind: input, shape index: {}]   ;;  %s1329_s4 = inlined_call_operand.vmem [shape: f32[3,1,32], index: 4, kind: input, shape index: {}]   ;;  %s1330_s5 = inlined_call_operand.vmem [shape: f32[3], index: 5, kind: input, shape index: {}]   ;;  %s1331_s6 = inlined_call_operand.vmem [shape: f32[8,3], index: 6, kind: output, shape index: {}]  }
   0x1   :  { %12 = vsyncpa [#allocation7], 0 }
   0x2   :  { %13 = vsyncpa [#allocation5], 0  ;;  %s1076_s21 = smov 0   ;;  %s1078_s22 = smov 0  }
   0x3   :  { %s1080_s23 = smov 0   ;;  %s1082_s24 = smov 0  }
   0x4   :  { %s1084_s25 = smov 0   ;;  %s1086_s26 = smov 0  }
   0x5 LB: > { %s1337_s27 = sadd.s32 4294967295, %s1027_s26   ;;  %p98_p0 = scmp.ne.s32.totalorder %s1015_s23, %s1011_s22  ;;  %s1027_s26 = sphi %s1086_s26, %s19_s26   ;;  %s1023_s25 = sphi %s1084_s25, %s1359_s25   ;;  %s1019_s24 = sphi %s1082_s24, %s1358_s24   ;;  %s1015_s23 = sphi %s1080_s23, %s1357_s23   ;;  %s1011_s22 = sphi %s1078_s22, %s1356_s22   ;;  %s1007_s21 = sphi %s1076_s21, %s1355_s21  }
   0x6   : > { %p99_p1 = scmp.eq.s32.totalorder %s1027_s26, 0  ;;  %p104_p2 = scmp.ne.s32.totalorder %s1011_s22, %s1007_s21 }
   0x7   : > { %p1111_p3 = scmp.eq.s32.totalorder %s1337_s27, 0  ;;  %p707_p4 = scmp.ge.s32.totalorder %s1027_s26, 1 }
   0x8   : > { %p100_p5 = por %p99_p1, %p98_p0  ;;  %p214_p6 = scmp.lt.s32.totalorder %s1027_s26, 4 }
   0x9   : > { %s1340_s28 = scalar_select %p1111_p3, 1, 0 }
   0xa   : > { %p1119_p7 = por %p1111_p3, %p104_p2  ;;  %p1123_p8 = pnand %p707_p4, %p214_p6 }
   0xb   : > { %s1029_s7 = smov [#allocation3]   ;;  %p797_p10 = scmp.lt.s32.totalorder %s1027_s26, 3 }
   0xc   : > { %s1341_s29 = scalar_select %p1119_p7, 1, 0 }
   0xd   : > { %s1342_s30 = scalar_select %p1123_p8, 1, 0 }
   0xe   : > { %s229_s8 = sshll.u32 %s1029_s7, 4  ;;  %p780_p9 = pneg %p1123_p8  ;;  %s230_s8 = int_to_ptr.vmem [resolvable:$true] %s229_s8 }
   0xf   : > { %s1030_s10 = smov [#allocation6]   ;;  %p1136_p12 = pnand %p797_p10, %p100_p5 }
  0x10   : > { %p1132_p11 = pnand %p780_p9, %p1111_p3  ;;  %s239_s11 = sshll.u32 %s1030_s10, 4  ;;  %s1140_s11 = int_to_ptr.vmem [resolvable:$true] %s239_s11 }
  0x11   : > { %s1344_s12 = scalar_select %p1136_p12, 1, 0 }
  0x12   : > { %s864_s15 = scalar_lea.hbm %s1325_s0, 128  ;;  %p1150_p0 = pneg %p1132_p11 }
  0x13   : > { %p865_p13 = scmp.ne.s32.totalorder %s1325_s0, %s864_s15  ;;  %p871_p4 = scmp.lt.u32.totalorder %s864_s15, %s1325_s0 }
  0x15   : > { %p867_p1 = pnand %p1150_p0, %p865_p13 }
  0x17   : > { %p868_p2 = pneg %p867_p1 }
  0x19   : > { %p873_p5 = pnand %p871_p4, %p868_p2 }
  0x1b   : > { %876 = shalt.err (!%p873_p5)
}
  0x1c   : > { %s877_s21 = scalar_lea.vmem %s230_s8, 128  ;;  %p885_p7 = scmp.lt.s32.totalorder %s230_s8, %s230_s8 }
  0x1d   : > { %p878_p6 = scmp.ne.s32.totalorder %s230_s8, %s877_s21  ;;  %p886_p3 = scmp.lt.s32.totalorder %s877_s21, %s877_s21 }
  0x1f   : > { %p880_p9 = pnand %p878_p6, %p1150_p0  ;;  %p887_p8 = por %p886_p3, %p885_p7 }
  0x21   : > { %p881_p10 = pneg %p880_p9 }
  0x23   : > { %p888_p12 = pnand %p887_p8, %p881_p10 }
  0x25   : > { %891 = shalt.err (!%p888_p12)
}
  0x26   : > { %783 = dma.hbm_to_vmem [thread:$0]  (!%p1132_p11), %s1325_s0, 128, %s230_s8, [#allocation4]  }
  0x27   : > { %s892_s15 = scalar_lea.hbm %s1326_s1, 256 }
  0x28   : > { %p893_p13 = scmp.ne.s32.totalorder %s1326_s1, %s892_s15  ;;  %p899_p7 = scmp.lt.u32.totalorder %s892_s15, %s1326_s1 }
  0x2a   : > { %p895_p1 = pnand %p893_p13, %p1150_p0 }
  0x2c   : > { %p896_p3 = pneg %p895_p1 }
  0x2e   : > { %p901_p8 = pnand %p899_p7, %p896_p3 }
  0x30   : > { %904 = shalt.err (!%p901_p8)
}
  0x31   : > { %s905_s8 = scalar_lea.vmem %s1140_s11, 256  ;;  %p913_p5 = scmp.lt.s32.totalorder %s1140_s11, %s1140_s11 }
  0x32   : > { %p906_p12 = scmp.ne.s32.totalorder %s1140_s11, %s905_s8  ;;  %p914_p6 = scmp.lt.s32.totalorder %s905_s8, %s905_s8 }
  0x34   : > { %p908_p2 = pnand %p906_p12, %p1150_p0  ;;  %p915_p9 = por %p914_p6, %p913_p5 }
  0x36   : > { %p909_p4 = pneg %p908_p2 }
  0x38   : > { %p916_p10 = pnand %p915_p9, %p909_p4 }
  0x3a   : > { %919 = shalt.err (!%p916_p10)
}
  0x3b   : > { %s1338_s21 = smov 128   ;;  %s1339_s7 = smov 8  }
  0x3c   : > { %786 = dma.hbm_to_vmem [thread:$0]  (!%p1132_p11), %s1326_s1, 256, %s1140_s11, [#allocation7], %s1338_s21, %s1338_s21, %s1339_s7  }
  0x3d   : > { %s253_s16 = sshll.u32 %s1330_s5, 4  ;;  %s254_s16 = int_to_ptr.vmem [resolvable:$true] %s253_s16 }
  0x3e   : > { %s920_s17 = scalar_lea.vmem %s254_s16, 16  ;;  %p928_p7 = scmp.lt.s32.totalorder %s254_s16, %s254_s16 }
  0x3f   : > { %p921_p13 = scmp.ne.s32.totalorder %s254_s16, %s920_s17  ;;  %p929_p8 = scmp.lt.s32.totalorder %s920_s17, %s920_s17 }
  0x41   : > { %p923_p1 = pnand %p921_p13, %p1150_p0  ;;  %p930_p12 = por %p929_p8, %p928_p7 }
  0x43   : > { %p924_p3 = pneg %p923_p1 }
  0x45   : > { %p931_p2 = pnand %p930_p12, %p924_p3 }
  0x47   : > { %934 = shalt.err (!%p931_p2)
}
  0x48   : > { %s1033_s19 = smov [#allocation9]   ;;  %s28_s20 = sadd.s32 1, %s1023_s25 }
  0x49   : > { %789 = dma.vmem_to_smem (!%p1132_p11), %s254_s16, 16, %s1033_s19, [#allocation5]  }
  0x4a   : > { %s705_s8 = sadd.s32 4294967295, %s1023_s25  ;;  %p29_p4 = scmp.ge.s32.totalorder %s28_s20, 3 }
  0x4b   : > { %p83_p0 = scmp.gt.s32.totalorder %s705_s8, 0  ;;  %s264_s18 = sand.u32 1, %s1027_s26  }
  0x4c   : > { %s266_s10 = sand.u32 1, %s1015_s23   ;;  %s1361_s20 = smov (%p29_p4, %s28_s20), 0 }
  0x4d   : > { %s1363_s8 = smov (!%p83_p0, %s705_s8), 0  ;;  %s706_s9 = sadd.s32 4294967295, %s1361_s20 }
  0x4e   : > { %p86_p5 = scmp.gt.s32.totalorder %s706_s9, 0  ;;  %s712_s13 = sshll.u32 %s266_s10, 5 }
  0x4f   : > { %s730_s14 = sshll.u32 %s1363_s8, 9  ;;  %s268_s19 = scalar_lea.vmem [#allocation8], %s712_s13 }
  0x50   : > { %s1365_s9 = smov (!%p86_p5, %s706_s9), 0  ;;  %s1210_s17 = scalar_lea.hbm %s1327_s2, %s730_s14 }
  0x51   : > { %s278_s27 = sshll.u32 %s268_s19, 4  ;;  %s88_s11 = ssub.s32 %s1363_s8, %s1365_s9  ;;  %s1212_s27 = int_to_ptr.vmem [resolvable:$true] %s278_s27 }
  0x52   : > { %p1214_p11 = scmp.eq.s32.totalorder %s88_s11, 0  ;;  %s1218_s10 = scalar_lea.sflag [#allocation4], %s264_s18 }
  0x53   : > { %s935_s7 = scalar_lea.hbm %s1210_s17, 512  ;;  %p1347_p9 = scmp.ne.s32.totalorder %s1344_s12, 0 }
  0x54   : > { %p936_p6 = scmp.ne.s32.totalorder %s1210_s17, %s935_s7  ;;  %s940_s8 = scalar_lea.hbm %s1327_s2, 1024 }
  0x55   : > { %p937_p10 = pneg %p1347_p9  ;;  %p941_p3 = scmp.lt.u32.totalorder %s1210_s17, %s1327_s2 }
  0x56   : > { %p942_p7 = scmp.lt.u32.totalorder %s940_s8, %s935_s7  ;;  %p944_p12 = scmp.lt.u32.totalorder %s935_s7, %s1210_s17 }
  0x57   : > { %p938_p13 = pnand %p937_p10, %p936_p6 }
  0x58   : > { %p943_p8 = por %p942_p7, %p941_p3 }
  0x59   : > { %p939_p1 = pneg %p938_p13 }
  0x5a   : > { %p945_p2 = por %p944_p12, %p943_p8 }
  0x5c   : > { %p946_p4 = pnand %p945_p2, %p939_p1 }
  0x5e   : > { %949 = shalt.err (!%p946_p4)
}
  0x5f   : > { %s950_s11 = scalar_lea.vmem %s1212_s27, 512  ;;  %s1034_s18 = smov [#allocation8]  }
  0x60   : > { %p951_p0 = scmp.ne.s32.totalorder %s1212_s27, %s950_s11  ;;  %s955_s16 = sshll.u32 %s1034_s18, 4  ;;  %s956_s16 = int_to_ptr.vmem [resolvable:$false] %s955_s16 }
  0x61   : > { %s957_s19 = scalar_lea.vmem %s956_s16, 1024  ;;  %p958_p13 = scmp.lt.s32.totalorder %s1212_s27, %s956_s16 }
  0x62   : > { %p953_p5 = pnand %p951_p0, %p937_p10  ;;  %p959_p3 = scmp.lt.s32.totalorder %s957_s19, %s950_s11 }
  0x64   : > { %p954_p6 = pneg %p953_p5  ;;  %p960_p7 = por %p959_p3, %p958_p13 }
  0x66   : > { %p961_p8 = pnand %p960_p7, %p954_p6 }
  0x68   : > { %964 = shalt.err (!%p961_p8)
}
  0x69   : > { %s1348_s7 = smov 8   ;;  %s1349_s14 = smov 128  }
  0x6a   : > { %793 = dma.hbm_to_vmem [thread:$0]  (!%p1347_p9), %s1210_s17, 512, %s1212_s27, %s1218_s10, %s1349_s14, %s1349_s14, %s1348_s7  }
  0x6b   : > { %s1350_s13 = sadd.s32 1, %s1015_s23  ;;  %p1351_p10 = scmp.ne.s32.totalorder %s1342_s30, 0 }
  0x6c   : > { %s1254_s8 = scalar_select %p1214_p11, %s1015_s23, %s1350_s13  }
  0x6d   : > { %302 = sbr.rel (%p1351_p10) target bundleno = 765 (0x2fd), region = 44  ;;  %p1352_p1 = scmp.ne.s32.totalorder (!%p1351_p10), %s1340_s28, 0 }
  0x74   : > { %990 = dma.done.wait (%p1352_p1), [#allocation4], 128  }
  0x75   : > { %992 = vsyncadd (%p1352_p1), [#allocation4], 4294967168 }
  0x76   : > { %994 = dma.done.wait (%p1352_p1), [#allocation7], 256  }
  0x77   : > { %996 = vsyncadd (%p1352_p1), [#allocation7], 4294967040  ;;  %s1353_s27 = sadd.s32 4294967295, %s1027_s26   ;;  %s314_s21 = sand.u32 1, %s1011_s22  }
  0x78   : > { %s312_s12 = sand.u32 1, %s1353_s27   ;;  %s719_s30 = sshll.u32 %s314_s21, 5 }
  0x79   : > { %s313_s17 = scalar_lea.sflag [#allocation4], %s312_s12  ;;  %s1269_s10 = scalar_lea.vmem [#allocation8], %s719_s30 }
  0x7a   : > { %p1354_p11 = scmp.ne.s32.totalorder %s1341_s29, 0 }
  0x7c   : > { %998 = dma.done.wait (%p1354_p11), %s313_s17, 512  }
  0x7d   : > { %1000 = vsyncadd (%p1354_p11), %s313_s17, 4294966784 }
  0x7e   : > { %1002 = dma.done.wait (%p1352_p1), [#allocation5], 16  }
  0x7f   : > { %1004 = vsyncadd (%p1352_p1), [#allocation5], 4294967280 }
  0x80   : > { %325 = sfence }
  0x81   : > { %p358_p9 = scmp.lt.s32.totalorder %s1019_s24, 2  ;;  %p721_p12 = scmp.ne.s32.totalorder %s1019_s24, 0 }
  0x82   : > { %v374_v1 = vld [vmem:[#allocation6] sm:$0xff] (!%p721_p12)  ;;  %v375_v2 = vld [vmem:[#allocation6 + $0x8] sm:$0xff] (!%p721_p12)  ;;  %v1035_v3 = vmov (!%p721_p12), 0.0|0.0   ;;  %vm1036_vm0 = vmmov (!%p721_p12), 0   ;;  %v1037_v5 = vmov (!%p721_p12), 0.0   ;;  %v373_v6 = vld [vmem:[#allocation3] sm:$0xff] (!%p721_p12)  ;;  %v377_v7 = vlaneseq (!%p721_p12) }
  0x83   : > { %s1281_s9 = scalar_select %p358_p9, %s1019_s24, 2 }
  0x84   : > { %372 = sbr.rel (%p721_p12) target bundleno = 355 (0x163), region = 64  ;;  %757 = vmatprep.subr.bf16.mxu0 (!%p721_p12), %v1035_v3  ;;  %v758_v4 = vpack.c.bf16 (!%p721_p12), %v375_v2, %v374_v1  ;;  %743 = vmatprep.mubr.msk.f32.mxu0 (!%p721_p12), %vm1036_vm0, %v1037_v5  ;;  %vm382_vm1 = vcmask (!%p721_p12), 130048   ;;  %v378_v8 = vshrl.u32 (!%p721_p12), %v377_v7, 7  ;;  %vm459_vm3 = vcmask (!%p721_p12), 261120  }
  0x85   : > { %s360_s18 = scalar_lea.vmem %s1328_s3, %s1281_s9  ;;  %s363_s19 = scalar_lea.vmem %s1329_s4, %s1281_s9 }
  0x86   : > { %v368_v0 = vld [vmem:[%s360_s18] sm:$0x1]  ;;  %759 = vmatpush3.bf16.msra.mxu0 (!%p721_p12), %v758_v4  ;;  %v379_v9 = vsub.s32 (!%p721_p12), 0, %v378_v8 }
  0x88   : > { %v380_v10 = vrot.slane (!%p721_p12), %v368_v0, %v379_v9 }
  0x89   : > { %744 = vmatmul.mubr.msk.f32.vlgmr.msra.gmra.mrb[0].mxu0 (!%p721_p12), %vm382_vm1, %v373_v6 }
 0x15c   : > { %v452_v11 = vpop.f32.mrb[0].mxu0 }
 0x15d   : > { %v453_v12 = vadd.f32 %v452_v11, %v380_v10  ;;  %v745_v13 = vpop.f32.mrb[1].mxu0 }
 0x15f   : > { %vm456_vm2 = vcmp.gt.f32.partialorder %v453_v12, 0.0  ;;  %v457_v14 = vmul.f32 0.2, %v453_v12 }
 0x161   : > { %v458_v15 = vsel %vm456_vm2, %v453_v12, %v457_v14 }
 0x162   : > { %460 = vst.msk [vmem:[#allocation2] sm:$0xff] %vm459_vm3, %v458_v15 }
 0x163 PF: > { %p723_p2 = scmp.le.s32.totalorder %s1019_s24, 0 }
 0x164   : > { %v466_v16 = vld [vmem:[%s1269_s10] sm:$0xff] (!%p723_p2)  ;;  %v467_v17 = vld [vmem:[%s1269_s10 + $0x8] sm:$0xff] (!%p723_p2)  ;;  %v468_v18 = vld [vmem:[%s1269_s10 + $0x10] sm:$0xff] (!%p723_p2)  ;;  %v1038_v19 = vmov (!%p723_p2), 0.0|0.0   ;;  %vm1039_vm4 = vmmov (!%p723_p2), 0   ;;  %v1040_v22 = vmov (!%p723_p2), 0.0   ;;  %v471_v25 = vlaneseq (!%p723_p2) }
 0x165   : > { %464 = sbr.rel (%p723_p2) target bundleno = 584 (0x248), region = 68  ;;  %760 = vmatprep.subr.bf16.mxu0 (!%p723_p2), %v1038_v19  ;;  %v761_v20 = vpack.c.bf16 (!%p723_p2), %v467_v17, %v466_v16  ;;  %v469_v21 = vld [vmem:[%s1269_s10 + $0x18] sm:$0xff] (!%p723_p2)  ;;  %754 = vmatprep.mubr.msk.f32.mxu0 (!%p723_p2), %vm1039_vm4, %v1040_v22  ;;  %vm476_vm5 = vcmask (!%p723_p2), 261120  }
 0x166   : > { %v764_v23 = vpack.c.bf16 (!%p723_p2), %v469_v21, %v468_v18  ;;  %v472_v26 = vshrl.u32 (!%p723_p2), %v471_v25, 7 }
 0x167   : > { %762 = vmatpush3.bf16.msra.mxu0 (!%p723_p2), %v761_v20 }
 0x168   : > { %763 = vmatprep.subr.bf16.mxu0 (!%p723_p2), %v1038_v19  ;;  %v473_v27 = vsub.s32 (!%p723_p2), 0, %v472_v26 }
 0x169   : > { %v465_v24 = vld [vmem:[#allocation2] sm:$0xff] (!%p723_p2) }
 0x16a   : > { %v474_v28 = vrot.slane (!%p723_p2), %v368_v0, %v473_v27 }
 0x16b   : > { %765 = vmatpush3.bf16.msra.mxu0 (!%p723_p2), %v764_v23 }
 0x16e   : > { %755 = vmatmul.mubr.msk.f32.vlgmr.msra.gmra.mrb[0].mxu0 %vm476_vm5, %v465_v24 }
 0x241   : > { %v546_v29 = vpop.f32.mrb[0].mxu0 }
 0x242   : > { %v547_v30 = vadd.f32 %v546_v29, %v474_v28  ;;  %v756_v31 = vpop.f32.mrb[1].mxu0 }
 0x244   : > { %vm550_vm6 = vcmp.gt.f32.partialorder %v547_v30, 0.0  ;;  %v551_v32 = vmul.f32 0.2, %v547_v30 }
 0x246   : > { %v552_v33 = vsel %vm550_vm6, %v547_v30, %v551_v32 }
 0x247   : > { %553 = vst.msk [vmem:[#allocation2] sm:$0xff] %vm476_vm5, %v552_v33 }
 0x248 PF: > { %v725_v35 = vld [vmem:[%s363_s19] ss:$0 sm:$0xff]  ;;  %vm563_vm7 = vcmask 261120   ;;  %s567_s14 = sld [smem:[#allocation9 + %s1019_s24]]  ;;  %v576_v43 = vlaneseq  ;;  %v578_v46 = vstv %s1019_s24  ;;  %vm580_vm9 = vcmask 23552  }
 0x24a   : > { %v577_v45 = vand.u32 127, %v576_v43 }
 0x24c   : > { %vm579_vm8 = vcmp.eq.s32.totalorder %v577_v45, %v578_v46 }
 0x24d   : > { %vm581_vm10 = vmand %vm580_vm9, %vm579_vm8 }
 0x24e   : > { %v554_v34 = vld [vmem:[#allocation2] sm:$0xff]  ;;  %v568_v38 = vstv %s567_s14 }
 0x24f   : > { %v562_v36 = vmul.f32 %v725_v35, %v554_v34 }
 0x251   : > { %v564_v37 = vsel %vm563_vm7, %v562_v36, 0.0 }
 0x252   : > { %565 = vadd.xlane.f32.xlu0 %v564_v37 }
 0x2df   : > { %v566_v39 = vpop.xlane.xlu0 %565 }
 0x2e0   : > { %v569_v40 = vadd.f32 %v568_v38, %v566_v39 }
 0x2e2   : > { %v726_v41 = vmul.f32 -1.442695, %v569_v40 }
 0x2e4   : > { %860 = vpow2.f32 %v726_v41 }
 0x2ee   : > { %v861_v42 = vpop.eup %860 }
 0x2ef   : > { %v573_v44 = vadd.f32 1.0, %v861_v42 }
 0x2f1   : > { %862 = vrcp.f32 %v573_v44 }
 0x2fb   : > { %v863_v47 = vpop.eup %862 }
 0x2fc   : > { %582 = vst.msk [vmem:[%s1331_s6] sm:$0xff] %vm581_vm10, %v863_v47 }
 0x2fd PF: > { %s19_s26 = sadd.s32 1, %s1027_s26   ;;  %s1355_s21 = smov %s1011_s22 }
 0x2fe   : > { %p16_p4 = scmp.ge.s32.totalorder %s19_s26, 5   ;;  %s1356_s22 = smov %s1015_s23 }
 0x2ff   : > { %s1357_s23 = smov %s1254_s8  ;;  %s1358_s24 = smov %s1023_s25 }
 0x300   : > { %s1359_s25 = smov %s1361_s20  ;;  %18 = sbr.rel (!%p16_p4) target bundleno = 5 (0x5), region = 111 }
 0x307   :  { %602 = vsyncpa [#allocation4], 1 }
 0x308   :  { %604 = vsyncpa [#allocation4 + $0x1], 1 }
 0x309   :  { %605 = vsyncpa [#allocation7], 1 }
 0x30a   :  { %606 = vsyncpa [#allocation5], 1 }
 0x30b   :  { %608 = vsyncpa [#allocation5 + $0x1], 1 }

</bundles_post_ra>
